<compile_context>
chip_gen: v7x
topology: tpu7x:2x2x1
jax: 0.10.0
libtpu: 0.0.40
codegen_flags: <defaults>
</compile_context>

<pallas_src>
import jax
import jax.numpy as jnp
from jax import lax
from jax.experimental import pallas as pl
from jax.experimental.pallas import tpu as pltpu

LANES = 128
SUBLANES = 8
CHUNK_ROWS = 1024            # inner compute chunk: 512 KiB of f32 per array


def _fold(v, nrows):
    """(nrows, 128) -> (8, 128) partial sum using only vreg-wise adds."""
    return jnp.sum(v.reshape(nrows // SUBLANES, SUBLANES, LANES), axis=0)


def _make_kernel(row_tile):
    ch = min(CHUNK_ROWS, row_tile)
    n_full_chunks = row_tile // ch
    rem_rows = row_tile - n_full_chunks * ch     # static remainder sub-chunk

    def kernel(nf_ref, x_ref, t_ref, out_ref, acc_ref):
        c = pl.program_id(0)                     # split (core) index
        i = pl.program_id(1)                     # tile index within the split
        n_inner = pl.num_programs(1)

        @pl.when(i == 0)
        def _init():
            acc_ref[...] = jnp.zeros_like(acc_ref)

        n_full = nf_ref[0]                       # fully-valid rows
        n_rem = nf_ref[1]                        # valid lanes of the partial row

        logical_tile = c * n_inner + i           # pre-clamp tile id
        tile_row0 = logical_tile * row_tile      # row-granularity: no i32 overflow

        def process(row_off, nrows, carry, masked):
            p_i, p_x, p_t = carry
            x = x_ref[pl.ds(row_off, nrows), :].astype(jnp.float32)
            t = t_ref[pl.ds(row_off, nrows), :].astype(jnp.float32)
            # sigmoid(x) == 0.5*tanh(0.5*x) + 0.5 : one EUP push per vreg.
            xs = 0.5 * jnp.tanh(0.5 * x) + 0.5
            if masked:
                row_ids = (tile_row0 + row_off
                           + lax.broadcasted_iota(jnp.int32, (nrows, 1), 0))
                lane_ids = lax.broadcasted_iota(jnp.int32, (1, LANES), 1)
                valid = (row_ids < n_full) | ((row_ids == n_full) &
                                              (lane_ids < n_rem))
                xs = jnp.where(valid, xs, 0.0)
                t = jnp.where(valid, t, 0.0)
            return (p_i + _fold(xs * t, nrows),   # intersection partial
                    p_x + _fold(xs, nrows),       # sum(sigmoid(x)) partial
                    p_t + _fold(t, nrows))        # sum(targets) partial

        def run(masked):
            zero = jnp.zeros((SUBLANES, LANES), jnp.float32)
            carry = (zero, zero, zero)

            def body(j, cr):
                off = pl.multiple_of(j * ch, ch)
                return process(off, ch, cr, masked)

            carry = lax.fori_loop(0, n_full_chunks, body, carry, unroll=True)
            if rem_rows > 0:
                carry = process(n_full_chunks * ch, rem_rows, carry, masked)
            p_i, p_x, p_t = carry
            acc_ref[0] += p_i
            acc_ref[1] += p_x
            acc_ref[2] += p_t

        tile_full = (tile_row0 + row_tile) <= n_full

        @pl.when(tile_full)                       # fully in-range tile: no mask
        def _fast():
            run(masked=False)

        @pl.when(jnp.logical_not(tile_full))      # tail / duplicate tile: mask
        def _masked():
            run(masked=True)

        @pl.when(i == n_inner - 1)
        def _finalize():
            out_ref[0] = acc_ref[...]

    return kernel


def _device_config():
    """(num_splits, input-pipeline-buffer byte budget) for the local chip."""
    try:
        kind = jax.devices()[0].device_kind.lower()
    except Exception:
        kind = ""
    if "v7" in kind or "7x" in kind:
        # 2 TensorCores / chip, 32 MiB default scoped VMEM (64 MiB physical).
        return 2, 16 * 1024 * 1024
    if "v5" in kind:
        # 1 TC, 16 MiB default scoped VMEM -> keep pipeline buffers to ~8 MiB.
        return 1, 8 * 1024 * 1024
    # v6e (and anything else): 1 TC, 32 MiB default scoped VMEM.
    return 1, 16 * 1024 * 1024


def _pick_row_tile(rows, itemsize_x, itemsize_t, buffer_budget_bytes):
    """Size the DMA tile by bytes so each step moves ~2-4 MiB per input."""
    bytes_per_row = 2 * (itemsize_x + itemsize_t) * LANES   # x2: double-buffered
    rt = (buffer_budget_bytes // bytes_per_row // CHUNK_ROWS) * CHUNK_ROWS
    rt = max(rt, CHUNK_ROWS)
    if rows <= rt:
        return rows            # one tile covers everything (rows % 8 == 0)
    return rt


def _dice_partial_sums(x2d, t2d, n_full_rows, n_rem, row_tile, num_splits):
    rows = x2d.shape[0]
    tiles_total = pl.cdiv(rows, row_tile)
    tiles_per_split = pl.cdiv(tiles_total, num_splits)
    nf = jnp.array([n_full_rows, n_rem], dtype=jnp.int32)

    def block_map(c, i, nf_ref):
        # Clamp so the DMA window always targets a real tile; logically
        # out-of-range (duplicate) tiles are fully masked inside the kernel.
        return (jnp.minimum(c * tiles_per_split + i, tiles_total - 1), 0)

    return pl.pallas_call(
        _make_kernel(row_tile),
        out_shape=jax.ShapeDtypeStruct(
            (num_splits, 3, SUBLANES, LANES), jnp.float32),
        grid_spec=pltpu.PrefetchScalarGridSpec(
            num_scalar_prefetch=1,
            grid=(num_splits, tiles_per_split),
            in_specs=[
                pl.BlockSpec((row_tile, LANES), block_map),
                pl.BlockSpec((row_tile, LANES), block_map),
            ],
            out_specs=pl.BlockSpec(
                (1, 3, SUBLANES, LANES), lambda c, i, nf_ref: (c, 0, 0, 0)),
            scratch_shapes=[pltpu.VMEM((3, SUBLANES, LANES), jnp.float32)],
        ),
        compiler_params=pltpu.CompilerParams(
            dimension_semantics=("parallel", "arbitrary"),
        ),
    )(nf, x2d, t2d)


def dice_loss(inputs, targets, smooth=1.0):
    """Matches PyTorch DiceLoss.forward: 1 - (2*I + s)/(sum_in + sum_tg + s)."""
    x = inputs.reshape(-1)            # native dtype; cast happens in-kernel
    t = targets.reshape(-1)
    n = x.shape[0]

    # Keep rows a multiple of 8 so the in-kernel fold is a pure vreg regroup.
    chunk = SUBLANES * LANES          # 1024 elements
    n_pad = pl.cdiv(n, chunk) * chunk
    if n_pad != n:
        x = jnp.pad(x, (0, n_pad - n))
        t = jnp.pad(t, (0, n_pad - n))

    rows = n_pad // LANES
    x2d = x.reshape(rows, LANES)
    t2d = t.reshape(rows, LANES)

    num_splits, budget = _device_config()
    row_tile = _pick_row_tile(rows, x.dtype.itemsize, t.dtype.itemsize, budget)

    # True element count at row granularity (avoids int32 element-index math).
    n_full_rows = n // LANES
    n_rem = n - n_full_rows * LANES

    partials = _dice_partial_sums(x2d, t2d, n_full_rows, n_rem,
                                  row_tile, num_splits)
    sums = jnp.sum(partials, axis=(0, 2, 3))      # (3,) tiny final reduce
    intersection, x_sum, t_sum = sums[0], sums[1], sums[2]
    dice = (2.0 * intersection + smooth) / (x_sum + t_sum + smooth)
    return 1.0 - dice


if __name__ == "__main__":
    key = jax.random.PRNGKey(0)
    k1, k2 = jax.random.split(key)
    # NCHW shapes consistent with a segmentation-style usage of DiceLoss.
    inputs = jax.random.normal(k1, (2, 4, 16, 16), dtype=jnp.float32)   # logits
    targets = (jax.random.uniform(k2, (2, 4, 16, 16)) > 0.5).astype(jnp.float32)

    loss = dice_loss(inputs, targets, smooth=1.0)
    jax.block_until_ready(loss)

    # sanity-check against a pure-JAX reference
    xr = jax.nn.sigmoid(inputs).reshape(-1)
    tr = targets.reshape(-1)
    inter = jnp.sum(xr * tr)
    ref = 1.0 - (2.0 * inter + 1.0) / (jnp.sum(xr) + jnp.sum(tr) + 1.0)
    assert jnp.allclose(loss, ref, atol=1e-5, rtol=1e-5), (loss, ref)

    print("KERNEL_OK")
</pallas_src>

<mosaic_0001>
module attributes {stable_mosaic.version = 11 : i64} {
  func.func @kernel(%arg0: i32, %arg1: i32, %arg2: memref<2xi32, #tpu.memory_space<smem>>, %arg3: memref<16x128xf32, #tpu.memory_space<vmem>>, %arg4: memref<16x128xf32, #tpu.memory_space<vmem>>, %arg5: memref<1x3x8x128xf32, #tpu.memory_space<vmem>>, %arg6: memref<3x8x128xf32, #tpu.memory_space<vmem>>) attributes {dimension_semantics = [#tpu.dimension_semantics<parallel>, #tpu.dimension_semantics<arbitrary>], iteration_bounds = array<i64: 1, 1>, scalar_prefetch = 1 : i64, scratch_operands = 1 : i64, tpu.core_type = #tpu.core_type<tc>, window_params = [{transform_indices = @transform_0, window_bounds = array<i64: 16, 128>}, {transform_indices = @transform_1, window_bounds = array<i64: 16, 128>}, {transform_indices = @transform_2, window_bounds = array<i64: 1, 3, 8, 128>}]} {
    %c0_i32 = arith.constant 0 : i32
    %0 = arith.cmpi eq, %arg1, %c0_i32 : i32
    %1 = arith.extui %0 : i1 to i32
    %c0_i32_0 = arith.constant 0 : i32
    %2 = arith.cmpi ne, %1, %c0_i32_0 : i32
    scf.if %2 {
      %cst = arith.constant 0.000000e+00 : f32
      %18 = vector.broadcast %cst : f32 to vector<3x8x128xf32>
      %c0_6 = arith.constant 0 : index
      %c0_7 = arith.constant 0 : index
      %c0_8 = arith.constant 0 : index
      %19 = vector.load %arg6[%c0_6, %c0_7, %c0_8] : memref<3x8x128xf32, #tpu.memory_space<vmem>>, vector<3x8x128xf32>
      tpu.vector_store %arg6[%c0_6, %c0_7, %c0_8], %18 {strides = array<i32>} : memref<3x8x128xf32, #tpu.memory_space<vmem>>, vector<3x8x128xf32>,
    } else {
    }
    %c0 = arith.constant 0 : index
    %3 = memref.load %arg2[%c0] : memref<2xi32, #tpu.memory_space<smem>>
    %c1 = arith.constant 1 : index
    %4 = memref.load %arg2[%c1] : memref<2xi32, #tpu.memory_space<smem>>
    %c1_i32 = arith.constant 1 : i32
    %5 = arith.muli %arg0, %c1_i32 : i32
    %6 = arith.addi %5, %arg1 : i32
    %c16_i32 = arith.constant 16 : i32
    %7 = arith.muli %6, %c16_i32 : i32
    %c16_i32_1 = arith.constant 16 : i32
    %8 = arith.addi %7, %c16_i32_1 : i32
    %9 = arith.cmpi sle, %8, %3 : i32
    %10 = arith.extui %9 : i1 to i32
    %c0_i32_2 = arith.constant 0 : i32
    %11 = arith.cmpi ne, %10, %c0_i32_2 : i32
    scf.if %11 {
      %cst = arith.constant 0.000000e+00 : f32
      %18 = vector.broadcast %cst : f32 to vector<8x128xf32>
      %c0_i32_6 = arith.constant 0 : i32
      %c16_i32_7 = arith.constant 16 : i32
      %19 = arith.muli %c0_i32_6, %c16_i32_7 : i32
      %20 = tpu.assume_multiple %19, 16 : i32
      %21 = arith.index_cast %20 : i32 to index
      %c0_8 = arith.constant 0 : index
      %22 = vector.load %arg3[%21, %c0_8] : memref<16x128xf32, #tpu.memory_space<vmem>>, vector<16x128xf32>
      %23 = arith.index_cast %20 : i32 to index
      %c0_9 = arith.constant 0 : index
      %24 = vector.load %arg4[%23, %c0_9] : memref<16x128xf32, #tpu.memory_space<vmem>>, vector<16x128xf32>
      %cst_10 = arith.constant 5.000000e-01 : f32
      %25 = vector.broadcast %cst_10 : f32 to vector<16x128xf32>
      %26 = arith.mulf %25, %22 : vector<16x128xf32>
      %27 = math.tanh %26 : vector<16x128xf32>
      %cst_11 = arith.constant 5.000000e-01 : f32
      %28 = vector.broadcast %cst_11 : f32 to vector<16x128xf32>
      %29 = arith.mulf %28, %27 : vector<16x128xf32>
      %cst_12 = arith.constant 5.000000e-01 : f32
      %30 = vector.broadcast %cst_12 : f32 to vector<16x128xf32>
      %31 = arith.addf %29, %30 : vector<16x128xf32>
      %32 = arith.mulf %31, %24 : vector<16x128xf32>
      %33 = vector.shape_cast %32 : vector<16x128xf32> to vector<2x8x128xf32>
      %cst_13 = arith.constant dense<0.000000e+00> : vector<8x128xf32>
      %34 = vector.multi_reduction <add>, %33, %cst_13 [0] : vector<2x8x128xf32> to vector<8x128xf32>
      %35 = arith.addf %18, %34 : vector<8x128xf32>
      %36 = vector.shape_cast %31 : vector<16x128xf32> to vector<2x8x128xf32>
      %cst_14 = arith.constant dense<0.000000e+00> : vector<8x128xf32>
      %37 = vector.multi_reduction <add>, %36, %cst_14 [0] : vector<2x8x128xf32> to vector<8x128xf32>
      %38 = arith.addf %18, %37 : vector<8x128xf32>
      %39 = vector.shape_cast %24 : vector<16x128xf32> to vector<2x8x128xf32>
      %cst_15 = arith.constant dense<0.000000e+00> : vector<8x128xf32>
      %40 = vector.multi_reduction <add>, %39, %cst_15 [0] : vector<2x8x128xf32> to vector<8x128xf32>
      %41 = arith.addf %18, %40 : vector<8x128xf32>
      %c1_i32_16 = arith.constant 1 : i32
      %c0_17 = arith.constant 0 : index
      %c0_18 = arith.constant 0 : index
      %c0_19 = arith.constant 0 : index
      %42 = vector.load %arg6[%c0_17, %c0_18, %c0_19] : memref<3x8x128xf32, #tpu.memory_space<vmem>>, vector<1x8x128xf32>
      %43 = vector.shape_cast %42 : vector<1x8x128xf32> to vector<8x128xf32>
      %44 = arith.addf %43, %35 : vector<8x128xf32>
      %c0_20 = arith.constant 0 : index
      %c0_21 = arith.constant 0 : index
      %c0_22 = arith.constant 0 : index
      %45 = vector.load %arg6[%c0_20, %c0_21, %c0_22] : memref<3x8x128xf32, #tpu.memory_space<vmem>>, vector<1x8x128xf32>
      %46 = vector.shape_cast %45 : vector<1x8x128xf32> to vector<8x128xf32>
      %47 = vector.shape_cast %44 : vector<8x128xf32> to vector<1x8x128xf32>
      tpu.vector_store %arg6[%c0_20, %c0_21, %c0_22], %47 {strides = array<i32>} : memref<3x8x128xf32, #tpu.memory_space<vmem>>, vector<1x8x128xf32>,
      %c1_23 = arith.constant 1 : index
      %c0_24 = arith.constant 0 : index
      %c0_25 = arith.constant 0 : index
      %48 = vector.load %arg6[%c1_23, %c0_24, %c0_25] : memref<3x8x128xf32, #tpu.memory_space<vmem>>, vector<1x8x128xf32>
      %49 = vector.shape_cast %48 : vector<1x8x128xf32> to vector<8x128xf32>
      %50 = arith.addf %49, %38 : vector<8x128xf32>
      %c1_26 = arith.constant 1 : index
      %c0_27 = arith.constant 0 : index
      %c0_28 = arith.constant 0 : index
      %51 = vector.load %arg6[%c1_26, %c0_27, %c0_28] : memref<3x8x128xf32, #tpu.memory_space<vmem>>, vector<1x8x128xf32>
      %52 = vector.shape_cast %51 : vector<1x8x128xf32> to vector<8x128xf32>
      %53 = vector.shape_cast %50 : vector<8x128xf32> to vector<1x8x128xf32>
      tpu.vector_store %arg6[%c1_26, %c0_27, %c0_28], %53 {strides = array<i32>} : memref<3x8x128xf32, #tpu.memory_space<vmem>>, vector<1x8x128xf32>,
      %c2 = arith.constant 2 : index
      %c0_29 = arith.constant 0 : index
      %c0_30 = arith.constant 0 : index
      %54 = vector.load %arg6[%c2, %c0_29, %c0_30] : memref<3x8x128xf32, #tpu.memory_space<vmem>>, vector<1x8x128xf32>
      %55 = vector.shape_cast %54 : vector<1x8x128xf32> to vector<8x128xf32>
      %56 = arith.addf %55, %41 : vector<8x128xf32>
      %c2_31 = arith.constant 2 : index
      %c0_32 = arith.constant 0 : index
      %c0_33 = arith.constant 0 : index
      %57 = vector.load %arg6[%c2_31, %c0_32, %c0_33] : memref<3x8x128xf32, #tpu.memory_space<vmem>>, vector<1x8x128xf32>
      %58 = vector.shape_cast %57 : vector<1x8x128xf32> to vector<8x128xf32>
      %59 = vector.shape_cast %56 : vector<8x128xf32> to vector<1x8x128xf32>
      tpu.vector_store %arg6[%c2_31, %c0_32, %c0_33], %59 {strides = array<i32>} : memref<3x8x128xf32, #tpu.memory_space<vmem>>, vector<1x8x128xf32>,
    } else {
    }
    %true = arith.constant true
    %12 = arith.xori %9, %true : i1
    %13 = arith.extui %12 : i1 to i32
    %c0_i32_3 = arith.constant 0 : i32
    %14 = arith.cmpi ne, %13, %c0_i32_3 : i32
    scf.if %14 {
      %cst = arith.constant 0.000000e+00 : f32
      %18 = vector.broadcast %cst : f32 to vector<8x128xf32>
      %c0_i32_6 = arith.constant 0 : i32
      %c16_i32_7 = arith.constant 16 : i32
      %19 = arith.muli %c0_i32_6, %c16_i32_7 : i32
      %20 = tpu.assume_multiple %19, 16 : i32
      %21 = arith.index_cast %20 : i32 to index
      %c0_8 = arith.constant 0 : index
      %22 = vector.load %arg3[%21, %c0_8] : memref<16x128xf32, #tpu.memory_space<vmem>>, vector<16x128xf32>
      %23 = arith.index_cast %20 : i32 to index
      %c0_9 = arith.constant 0 : index
      %24 = vector.load %arg4[%23, %c0_9] : memref<16x128xf32, #tpu.memory_space<vmem>>, vector<16x128xf32>
      %cst_10 = arith.constant 5.000000e-01 : f32
      %25 = vector.broadcast %cst_10 : f32 to vector<16x128xf32>
      %26 = arith.mulf %25, %22 : vector<16x128xf32>
      %27 = math.tanh %26 : vector<16x128xf32>
      %cst_11 = arith.constant 5.000000e-01 : f32
      %28 = vector.broadcast %cst_11 : f32 to vector<16x128xf32>
      %29 = arith.mulf %28, %27 : vector<16x128xf32>
      %cst_12 = arith.constant 5.000000e-01 : f32
      %30 = vector.broadcast %cst_12 : f32 to vector<16x128xf32>
      %31 = arith.addf %29, %30 : vector<16x128xf32>
      %32 = arith.addi %7, %20 : i32
      %33 = tpu.iota {dimensions = array<i32: 0>} : vector<16x1xi32>
      %34 = vector.broadcast %32 : i32 to vector<16x1xi32>
      %35 = arith.addi %34, %33 : vector<16x1xi32>
      %36 = tpu.iota {dimensions = array<i32: 1>} : vector<1x128xi32>
      %37 = vector.broadcast %3 : i32 to vector<16x1xi32>
      %38 = arith.cmpi slt, %35, %37 : vector<16x1xi32>
      %39 = vector.broadcast %3 : i32 to vector<16x1xi32>
      %40 = arith.cmpi eq, %35, %39 : vector<16x1xi32>
      %41 = vector.broadcast %4 : i32 to vector<1x128xi32>
      %42 = arith.cmpi slt, %36, %41 : vector<1x128xi32>
      %43 = vector.broadcast %40 : vector<16x1xi1> to vector<16x128xi1>
      %44 = vector.broadcast %42 : vector<1x128xi1> to vector<16x128xi1>
      %45 = arith.andi %43, %44 : vector<16x128xi1>
      %46 = vector.broadcast %38 : vector<16x1xi1> to vector<16x128xi1>
      %47 = arith.ori %46, %45 : vector<16x128xi1>
      %cst_13 = arith.constant 0.000000e+00 : f32
      %48 = vector.broadcast %cst_13 : f32 to vector<16x128xf32>
      %49 = arith.select %47, %31, %48 : vector<16x128xi1>, vector<16x128xf32>
      %cst_14 = arith.constant 0.000000e+00 : f32
      %50 = vector.broadcast %cst_14 : f32 to vector<16x128xf32>
      %51 = arith.select %47, %24, %50 : vector<16x128xi1>, vector<16x128xf32>
      %52 = arith.mulf %49, %51 : vector<16x128xf32>
      %53 = vector.shape_cast %52 : vector<16x128xf32> to vector<2x8x128xf32>
      %cst_15 = arith.constant dense<0.000000e+00> : vector<8x128xf32>
      %54 = vector.multi_reduction <add>, %53, %cst_15 [0] : vector<2x8x128xf32> to vector<8x128xf32>
      %55 = arith.addf %18, %54 : vector<8x128xf32>
      %56 = vector.shape_cast %49 : vector<16x128xf32> to vector<2x8x128xf32>
      %cst_16 = arith.constant dense<0.000000e+00> : vector<8x128xf32>
      %57 = vector.multi_reduction <add>, %56, %cst_16 [0] : vector<2x8x128xf32> to vector<8x128xf32>
      %58 = arith.addf %18, %57 : vector<8x128xf32>
      %59 = vector.shape_cast %51 : vector<16x128xf32> to vector<2x8x128xf32>
      %cst_17 = arith.constant dense<0.000000e+00> : vector<8x128xf32>
      %60 = vector.multi_reduction <add>, %59, %cst_17 [0] : vector<2x8x128xf32> to vector<8x128xf32>
      %61 = arith.addf %18, %60 : vector<8x128xf32>
      %c1_i32_18 = arith.constant 1 : i32
      %c0_19 = arith.constant 0 : index
      %c0_20 = arith.constant 0 : index
      %c0_21 = arith.constant 0 : index
      %62 = vector.load %arg6[%c0_19, %c0_20, %c0_21] : memref<3x8x128xf32, #tpu.memory_space<vmem>>, vector<1x8x128xf32>
      %63 = vector.shape_cast %62 : vector<1x8x128xf32> to vector<8x128xf32>
      %64 = arith.addf %63, %55 : vector<8x128xf32>
      %c0_22 = arith.constant 0 : index
      %c0_23 = arith.constant 0 : index
      %c0_24 = arith.constant 0 : index
      %65 = vector.load %arg6[%c0_22, %c0_23, %c0_24] : memref<3x8x128xf32, #tpu.memory_space<vmem>>, vector<1x8x128xf32>
      %66 = vector.shape_cast %65 : vector<1x8x128xf32> to vector<8x128xf32>
      %67 = vector.shape_cast %64 : vector<8x128xf32> to vector<1x8x128xf32>
      tpu.vector_store %arg6[%c0_22, %c0_23, %c0_24], %67 {strides = array<i32>} : memref<3x8x128xf32, #tpu.memory_space<vmem>>, vector<1x8x128xf32>,
      %c1_25 = arith.constant 1 : index
      %c0_26 = arith.constant 0 : index
      %c0_27 = arith.constant 0 : index
      %68 = vector.load %arg6[%c1_25, %c0_26, %c0_27] : memref<3x8x128xf32, #tpu.memory_space<vmem>>, vector<1x8x128xf32>
      %69 = vector.shape_cast %68 : vector<1x8x128xf32> to vector<8x128xf32>
      %70 = arith.addf %69, %58 : vector<8x128xf32>
      %c1_28 = arith.constant 1 : index
      %c0_29 = arith.constant 0 : index
      %c0_30 = arith.constant 0 : index
      %71 = vector.load %arg6[%c1_28, %c0_29, %c0_30] : memref<3x8x128xf32, #tpu.memory_space<vmem>>, vector<1x8x128xf32>
      %72 = vector.shape_cast %71 : vector<1x8x128xf32> to vector<8x128xf32>
      %73 = vector.shape_cast %70 : vector<8x128xf32> to vector<1x8x128xf32>
      tpu.vector_store %arg6[%c1_28, %c0_29, %c0_30], %73 {strides = array<i32>} : memref<3x8x128xf32, #tpu.memory_space<vmem>>, vector<1x8x128xf32>,
      %c2 = arith.constant 2 : index
      %c0_31 = arith.constant 0 : index
      %c0_32 = arith.constant 0 : index
      %74 = vector.load %arg6[%c2, %c0_31, %c0_32] : memref<3x8x128xf32, #tpu.memory_space<vmem>>, vector<1x8x128xf32>
      %75 = vector.shape_cast %74 : vector<1x8x128xf32> to vector<8x128xf32>
      %76 = arith.addf %75, %61 : vector<8x128xf32>
      %c2_33 = arith.constant 2 : index
      %c0_34 = arith.constant 0 : index
      %c0_35 = arith.constant 0 : index
      %77 = vector.load %arg6[%c2_33, %c0_34, %c0_35] : memref<3x8x128xf32, #tpu.memory_space<vmem>>, vector<1x8x128xf32>
      %78 = vector.shape_cast %77 : vector<1x8x128xf32> to vector<8x128xf32>
      %79 = vector.shape_cast %76 : vector<8x128xf32> to vector<1x8x128xf32>
      tpu.vector_store %arg6[%c2_33, %c0_34, %c0_35], %79 {strides = array<i32>} : memref<3x8x128xf32, #tpu.memory_space<vmem>>, vector<1x8x128xf32>,
    } else {
    }
    %c0_i32_4 = arith.constant 0 : i32
    %15 = arith.cmpi eq, %arg1, %c0_i32_4 : i32
    %16 = arith.extui %15 : i1 to i32
    %c0_i32_5 = arith.constant 0 : i32
    %17 = arith.cmpi ne, %16, %c0_i32_5 : i32
    scf.if %17 {
      %c0_6 = arith.constant 0 : index
      %c0_7 = arith.constant 0 : index
      %c0_8 = arith.constant 0 : index
      %18 = vector.load %arg6[%c0_6, %c0_7, %c0_8] : memref<3x8x128xf32, #tpu.memory_space<vmem>>, vector<3x8x128xf32>
      %c0_9 = arith.constant 0 : index
      %c0_10 = arith.constant 0 : index
      %c0_11 = arith.constant 0 : index
      %c0_12 = arith.constant 0 : index
      %19 = vector.load %arg5[%c0_9, %c0_10, %c0_11, %c0_12] : memref<1x3x8x128xf32, #tpu.memory_space<vmem>>, vector<1x3x8x128xf32>
      %20 = vector.shape_cast %19 : vector<1x3x8x128xf32> to vector<3x8x128xf32>
      %21 = vector.shape_cast %18 : vector<3x8x128xf32> to vector<1x3x8x128xf32>
      tpu.vector_store %arg5[%c0_9, %c0_10, %c0_11, %c0_12], %21 {strides = array<i32>} : memref<1x3x8x128xf32, #tpu.memory_space<vmem>>, vector<1x3x8x128xf32>,
    } else {
    }
    return
  }
  func.func @transform_0(%arg0: i32, %arg1: i32, %arg2: memref<2xi32, #tpu.memory_space<smem>>) -> (i32, i32) {
    %c1_i32 = arith.constant 1 : i32
    %0 = arith.muli %arg0, %c1_i32 : i32
    %1 = arith.addi %0, %arg1 : i32
    %c0_i32 = arith.constant 0 : i32
    %2 = arith.minsi %1, %c0_i32 : i32
    %c0_i32_0 = arith.constant 0 : i32
    %c0_i32_1 = arith.constant 0 : i32
    return %2, %c0_i32_0 : i32, i32
  }
  func.func @transform_1(%arg0: i32, %arg1: i32, %arg2: memref<2xi32, #tpu.memory_space<smem>>) -> (i32, i32) {
    %c1_i32 = arith.constant 1 : i32
    %0 = arith.muli %arg0, %c1_i32 : i32
    %1 = arith.addi %0, %arg1 : i32
    %c0_i32 = arith.constant 0 : i32
    %2 = arith.minsi %1, %c0_i32 : i32
    %c0_i32_0 = arith.constant 0 : i32
    %c0_i32_1 = arith.constant 0 : i32
    return %2, %c0_i32_0 : i32, i32
  }
  func.func @transform_2(%arg0: i32, %arg1: i32, %arg2: memref<2xi32, #tpu.memory_space<smem>>) -> (i32, i32, i32, i32) {
    %c0_i32 = arith.constant 0 : i32
    %c0_i32_0 = arith.constant 0 : i32
    %c0_i32_1 = arith.constant 0 : i32
    %c0_i32_2 = arith.constant 0 : i32
    return %arg0, %c0_i32, %c0_i32_0, %c0_i32_1 : i32, i32, i32, i32
  }
}

</mosaic_0001>

<bundles_post_ra>
// kernel: tpu_custom_call.1
= control target key start
LH: loop header
LB: loop body
LE: loop exit
PB: predicated region body
PF: predicated region fallthrough
CT: control target
= control target key end

     0   :  { %s408_s0 = inlined_call_operand.hbm [shape: s32[2], index: 0, kind: input, shape index: {}]   ;;  %s409_s1 = inlined_call_operand.hbm [shape: f32[16,128], index: 1, kind: input, shape index: {}]   ;;  %s410_s2 = inlined_call_operand.hbm [shape: f32[16,128], index: 2, kind: input, shape index: {}]   ;;  %s411_s3 = inlined_call_operand.hbm [shape: f32[1,3,8,128], index: 3, kind: output, shape index: {}]  }
   0x1   :  { %s232_s14 = scalar_lea.hbm %s408_s0, 16 }
   0x2   :  { %p233_p0 = scmp.ne.s32.totalorder %s408_s0, %s232_s14  ;;  %p236_p1 = scmp.lt.u32.totalorder %s232_s14, %s408_s0 }
   0x4   :  { %p238_p2 = pnand %p236_p1, %p233_p0 }
   0x6   :  { %241 = shalt.err (!%p238_p2)  }
   0x7   :  { %s316_s19 = smov [#allocation4]  }
   0x8   :  { %9 = dma.hbm_to_smem %s408_s0, 16, %s316_s19, [#allocation3] }
   0x9   :  { %308 = dma.done.wait [#allocation3], 16 }
   0xa   :  { %309 = vsyncadd [#allocation3], 4294967280 }
   0xb   :  { %11 = sfence }
   0xc   :  { %12 = vsyncpa [#allocation6], 0 }
   0xd   :  { %13 = vsyncpa [#allocation9], 0 }
   0xe   :  { %14 = vsyncpa [#allocation7], 0  ;;  %s317_s22 = smov [#allocation5]   ;;  %s242_s26 = scalar_lea.hbm %s409_s1, 256 }
   0xf   :  { %s26_s23 = sshll.u32 %s317_s22, 4  ;;  %p243_p3 = scmp.ne.s32.totalorder %s409_s1, %s242_s26  ;;  %s27_s23 = int_to_ptr.vmem [resolvable:$true] %s26_s23 }
  0x10   :  { %p246_p4 = scmp.lt.u32.totalorder %s242_s26, %s409_s1 }
  0x12   :  { %p248_p5 = pnand %p246_p4, %p243_p3 }
  0x14   :  { %251 = shalt.err (!%p248_p5)
}
  0x15   :  { %s252_s0 = scalar_lea.vmem %s27_s23, 256  ;;  %p257_p7 = scmp.lt.s32.totalorder %s27_s23, %s27_s23 }
  0x16   :  { %p253_p6 = scmp.ne.s32.totalorder %s27_s23, %s252_s0  ;;  %p258_p8 = scmp.lt.s32.totalorder %s252_s0, %s252_s0 }
  0x18   :  { %p259_p9 = por %p258_p8, %p257_p7 }
  0x1a   :  { %p260_p10 = pnand %p259_p9, %p253_p6 }
  0x1c   :  { %263 = shalt.err (!%p260_p10)
}
  0x1d   :  { %s318_s4 = smov 128   ;;  %s319_s5 = smov 8  }
  0x1e   :  { %32 = dma.hbm_to_vmem [thread:$0]  %s409_s1, 256, %s27_s23, [#allocation6], %s318_s4, %s318_s4, %s319_s5  }
  0x1f   :  { %s320_s8 = smov [#allocation8]   ;;  %s264_s12 = scalar_lea.hbm %s410_s2, 256 }
  0x20   :  { %s44_s9 = sshll.u32 %s320_s8, 4  ;;  %p265_p11 = scmp.ne.s32.totalorder %s410_s2, %s264_s12  ;;  %s45_s9 = int_to_ptr.vmem [resolvable:$true] %s44_s9 }
  0x21   :  { %p268_p12 = scmp.lt.u32.totalorder %s264_s12, %s410_s2 }
  0x23   :  { %p270_p13 = pnand %p268_p12, %p265_p11 }
  0x25   :  { %273 = shalt.err (!%p270_p13)
}
  0x26   :  { %s274_s17 = scalar_lea.vmem %s45_s9, 256  ;;  %p279_p1 = scmp.lt.s32.totalorder %s45_s9, %s45_s9 }
  0x27   :  { %p275_p0 = scmp.ne.s32.totalorder %s45_s9, %s274_s17  ;;  %p280_p2 = scmp.lt.s32.totalorder %s274_s17, %s274_s17 }
  0x29   :  { %p281_p3 = por %p280_p2, %p279_p1 }
  0x2b   :  { %p282_p4 = pnand %p281_p3, %p275_p0 }
  0x2d   :  { %285 = shalt.err (!%p282_p4)
}
  0x2e   :  { %50 = dma.hbm_to_vmem [thread:$0]  %s410_s2, 256, %s45_s9, [#allocation9], %s318_s4, %s318_s4, %s319_s5  }
  0x2f   :  { %310 = dma.done.wait [#allocation6], 256  }
  0x30   :  { %311 = vsyncadd [#allocation6], 4294967040 }
  0x31   :  { %312 = dma.done.wait [#allocation9], 256  }
  0x32   :  { %313 = vsyncadd [#allocation9], 4294967040  ;;  %s385_s19 = sld [smem:[#allocation4]]  ;;  %s387_s20 = sld [smem:[#allocation4 + $0x1]]  ;;  %v321_v0 = vmov 0.0  }
  0x33   :  { %69 = vst [vmem:[#allocation2] sm:$0xff] %v321_v0  ;;  %70 = vst [vmem:[#allocation2 + $0x8] sm:$0xff] %v321_v0 }
  0x34   :  { %71 = vst [vmem:[#allocation2 + $0x10] sm:$0xff] %v321_v0 }
  0x38   :  { %p214_p5 = scmp.lt.s32.totalorder %s385_s19, 16 }
  0x39   :  { %v81_v1 = vld [vmem:[#allocation5] sm:$0xff] (!%p214_p5)  ;;  %v82_v2 = vld [vmem:[#allocation5 + $0x8] sm:$0xff] (!%p214_p5)  ;;  %v83_v3 = vld [vmem:[#allocation8] sm:$0xff] (!%p214_p5) }
  0x3a   :  { %80 = sbr.rel (%p214_p5) target bundleno = 83 (0x53), region = 25  ;;  %v84_v4 = vld [vmem:[#allocation8 + $0x8] sm:$0xff] (!%p214_p5)  ;;  %v85_v5 = vmul.f32 (!%p214_p5), 0.5, %v81_v1  ;;  %v86_v6 = vmul.f32 (!%p214_p5), 0.5, %v82_v2  ;;  %v105_v17 = vld [vmem:[#allocation2 + $0x8] sm:$0xff] (!%p214_p5)  ;;  %v101_v20 = vld [vmem:[#allocation2] sm:$0xff] (!%p214_p5) }
  0x3b   :  { %v99_v7 = vadd.f32 (!%p214_p5), %v84_v4, %v83_v3  ;;  %v109_v8 = vld [vmem:[#allocation2 + $0x10] sm:$0xff] (!%p214_p5) }
  0x3c   :  { %224 = vtanh.f32 (!%p214_p5), %v85_v5 }
  0x3d   :  { %226 = vtanh.f32 (!%p214_p5), %v86_v6  ;;  %v110_v9 = vadd.f32 (!%p214_p5), %v109_v8, %v99_v7 }
  0x3f   :  { %111 = vst [vmem:[#allocation2 + $0x10] sm:$0xff] (!%p214_p5), %v110_v9 }
  0x46   :  { %v225_v10 = vpop.eup %224 }
  0x47   :  { %v227_v11 = vpop.eup %226  ;;  %v89_v12 = vmul.f32 0.5, %v225_v10 }
  0x48   :  { %v90_v13 = vmul.f32 0.5, %v227_v11 }
  0x49   :  { %v91_v14 = vadd.f32 0.5, %v89_v12 }
  0x4a   :  { %v92_v15 = vadd.f32 0.5, %v90_v13 }
  0x4b   :  { %v93_v16 = vmul.f32 %v91_v14, %v83_v3 }
  0x4c   :  { %v94_v18 = vmul.f32 %v92_v15, %v84_v4  ;;  %v97_v19 = vadd.f32 %v92_v15, %v91_v14 }
  0x4e   :  { %v95_v21 = vadd.f32 %v94_v18, %v93_v16  ;;  %v106_v22 = vadd.f32 %v105_v17, %v97_v19 }
  0x50   :  { %v102_v23 = vadd.f32 %v101_v20, %v95_v21  ;;  %107 = vst [vmem:[#allocation2 + $0x8] sm:$0xff] %v106_v22 }
  0x52   :  { %103 = vst [vmem:[#allocation2] sm:$0xff] %v102_v23 }
  0x53 PF:  { %p216_p6 = scmp.ge.s32.totalorder %s385_s19, 16 }
  0x54   :  { %v116_v24 = vld [vmem:[#allocation5] sm:$0xff] (!%p216_p6)  ;;  %v117_v25 = vld [vmem:[#allocation5 + $0x8] sm:$0xff] (!%p216_p6)  ;;  %v129_v26 = vlaneseq (!%p216_p6)  ;;  %v137_v29 = vstv (!%p216_p6), %s385_s19  ;;  %v142_v32 = vstv (!%p216_p6), %s387_s20  ;;  %v118_v34 = vld [vmem:[#allocation8] sm:$0xff] (!%p216_p6) }
  0x55   :  { %115 = sbr.rel (%p216_p6) target bundleno = 111 (0x6f), region = 29  ;;  %v120_v27 = vmul.f32 (!%p216_p6), 0.5, %v116_v24  ;;  %v121_v28 = vmul.f32 (!%p216_p6), 0.5, %v117_v25  ;;  %v119_v35 = vld [vmem:[#allocation8 + $0x8] sm:$0xff] (!%p216_p6) }
  0x56   :  { %v130_v30 = vshrl.u32 (!%p216_p6), %v129_v26, 7  ;;  %v136_v31 = vand.u32 (!%p216_p6), 127, %v129_v26 }
  0x57   :  { %228 = vtanh.f32 (!%p216_p6), %v120_v27  ;;  %v174_v50 = vld [vmem:[#allocation2 + $0x8] sm:$0xff] (!%p216_p6) }
  0x58   :  { %230 = vtanh.f32 (!%p216_p6), %v121_v28  ;;  %v131_v33 = vadd.s32 (!%p216_p6), 8, %v130_v30  ;;  %vm140_vm0 = vcmp.eq.s32.totalorder (!%p216_p6), %v130_v30, %v137_v29  ;;  %vm138_vm1 = vcmp.lt.s32.totalorder (!%p216_p6), %v130_v30, %v137_v29  ;;  %v178_v38 = vld [vmem:[#allocation2 + $0x10] sm:$0xff] (!%p216_p6) }
  0x59   :  { %vm143_vm2 = vcmp.lt.s32.totalorder (!%p216_p6), %v136_v31, %v142_v32  ;;  %v170_v53 = vld [vmem:[#allocation2] sm:$0xff] (!%p216_p6) }
  0x5a   :  { %vm139_vm3 = vcmp.lt.s32.totalorder (!%p216_p6), %v131_v33, %v137_v29  ;;  %vm141_vm4 = vcmp.eq.s32.totalorder (!%p216_p6), %v131_v33, %v137_v29  ;;  %vm150_vm5 = vmand (!%p216_p6), %vm140_vm0, %vm143_vm2 }
  0x5b   :  { %vm151_vm6 = vmand (!%p216_p6), %vm141_vm4, %vm143_vm2 }
  0x5c   :  { %vm156_vm7 = vmor %vm138_vm1, %vm150_vm5 }
  0x5d   :  { %vm157_vm8 = vmor %vm139_vm3, %vm151_vm6  ;;  %v160_v36 = vsel %vm156_vm7, %v118_v34, 0.0 }
  0x5e   :  { %v161_v37 = vsel %vm157_vm8, %v119_v35, 0.0 }
  0x5f   :  { %v168_v39 = vadd.f32 %v161_v37, %v160_v36 }
  0x61   :  { %v229_v40 = vpop.eup %228  ;;  %v179_v41 = vadd.f32 %v178_v38, %v168_v39 }
  0x62   :  { %v231_v42 = vpop.eup %230  ;;  %v124_v43 = vmul.f32 0.5, %v229_v40 }
  0x63   :  { %v125_v44 = vmul.f32 0.5, %v231_v42  ;;  %180 = vst [vmem:[#allocation2 + $0x10] sm:$0xff] %v179_v41 }
  0x64   :  { %v126_v45 = vadd.f32 0.5, %v124_v43 }
  0x65   :  { %v127_v46 = vadd.f32 0.5, %v125_v44 }
  0x66   :  { %v158_v47 = vsel %vm156_vm7, %v126_v45, 0.0 }
  0x67   :  { %v159_v48 = vsel %vm157_vm8, %v127_v46, 0.0  ;;  %v162_v49 = vmul.f32 %v160_v36, %v158_v47 }
  0x68   :  { %v163_v51 = vmul.f32 %v161_v37, %v159_v48  ;;  %v166_v52 = vadd.f32 %v159_v48, %v158_v47 }
  0x6a   :  { %v164_v54 = vadd.f32 %v163_v51, %v162_v49  ;;  %v175_v55 = vadd.f32 %v174_v50, %v166_v52 }
  0x6c   :  { %v171_v56 = vadd.f32 %v170_v53, %v164_v54  ;;  %176 = vst [vmem:[#allocation2 + $0x8] sm:$0xff] %v175_v55 }
  0x6e   :  { %172 = vst [vmem:[#allocation2] sm:$0xff] %v171_v56 }
  0x6f PF:  { %v186_v59 = vld [vmem:[#allocation2 + $0x10] sm:$0xff]  ;;  %s322_s2 = smov [#allocation10]  }
  0x70   :  { %189 = vst [vmem:[#allocation10 + $0x10] sm:$0xff] %v186_v59  ;;  %s195_s21 = sshll.u32 %s322_s2, 4  ;;  %s196_s21 = int_to_ptr.vmem [resolvable:$true] %s195_s21 }
  0x71   :  { %s286_s22 = scalar_lea.vmem %s196_s21, 384  ;;  %p291_p8 = scmp.lt.s32.totalorder %s196_s21, %s196_s21 }
  0x72   :  { %p287_p7 = scmp.ne.s32.totalorder %s196_s21, %s286_s22  ;;  %p292_p9 = scmp.lt.s32.totalorder %s286_s22, %s286_s22 }
  0x73   :  { %v185_v58 = vld [vmem:[#allocation2 + $0x8] sm:$0xff] }
  0x74   :  { %188 = vst [vmem:[#allocation10 + $0x8] sm:$0xff] %v185_v58  ;;  %p293_p10 = por %p292_p9, %p291_p8 }
  0x75   :  { %v184_v57 = vld [vmem:[#allocation2] sm:$0xff] }
  0x76   :  { %187 = vst [vmem:[#allocation10] sm:$0xff] %v184_v57  ;;  %p294_p11 = pnand %p293_p10, %p287_p7 }
  0x78   :  { %297 = shalt.err (!%p294_p11)
}
  0x79   :  { %s298_s25 = scalar_lea.hbm %s411_s3, 384 }
  0x7a   :  { %p299_p12 = scmp.ne.s32.totalorder %s411_s3, %s298_s25  ;;  %p302_p13 = scmp.lt.u32.totalorder %s298_s25, %s411_s3 }
  0x7c   :  { %p304_p0 = pnand %p302_p13, %p299_p12 }
  0x7e   :  { %307 = shalt.err (!%p304_p0)
}
  0x7f   :  { %201 = dma.vmem_to_hbm [thread:$0]  %s196_s21, 384, %s411_s3, [#allocation7], %s318_s4, %s318_s4, %s319_s5  }
  0x80   :  { %314 = dma.done.wait [#allocation7], 384  }
  0x81   :  { %315 = vsyncadd [#allocation7], 4294966912 }
  0x82   :  { %205 = vsyncpa [#allocation6], 1 }
  0x83   :  { %206 = vsyncpa [#allocation9], 1 }
  0x84   :  { %207 = vsyncpa [#allocation7], 1 }

</bundles_post_ra>
